<compile_context>
chip_gen: v6e
topology: v6e:2x2x1
jax: 0.10.0
libtpu: 0.0.40
codegen_flags: <defaults>
</compile_context>

<pallas_src>
import functools

import jax
import jax.numpy as jnp
from jax.experimental import pallas as pl
from jax.experimental.pallas import tpu as pltpu


def _stable_softplus(x):
    # log1p(exp(x)) without overflow for large x.
    return jnp.maximum(x, 0.0) + jnp.log1p(jnp.exp(-jnp.abs(x)))


# ----------------------------------------------------------------------------
# Fused forward + KL kernel.
# Grid = (grid_n, grid_k); K (reduction) is the trailing axis.
# ----------------------------------------------------------------------------
def _bayes_linear_fused_kernel(
    x_ref, wmu_ref, wrho_ref, lam_ref, bmu_ref, brho_ref, eps_ref,   # inputs
    out_ref, kl_ref,                                                 # outputs
    eb_acc, vb_acc, kl_acc,                                          # scratch
    *, n_valid, k_valid, n_padded, k_padded, tile_n, tile_k):
    i = pl.program_id(0)
    k = pl.program_id(1)
    nk = pl.num_programs(1)

    wmu = wmu_ref[...]                       # (tile_n, tile_k)
    wrho = wrho_ref[...]
    lam = lam_ref[...]

    # sigmoid via a single EUP tanh instead of exp + divide.
    alpha_q = 0.5 * jnp.tanh(0.5 * lam) + 0.5
    one_m_a = 1.0 - alpha_q
    w_sigma = _stable_softplus(wrho)
    ws2 = w_sigma * w_sigma
    wmu2 = wmu * wmu

    e_w = wmu * alpha_q                                   # (tile_n, tile_k)
    var_w = alpha_q * (ws2 + one_m_a * wmu2)              # (tile_n, tile_k)

    x = x_ref[...]                                        # (b_pad, tile_k)
    dn = (((1,), (1,)), ((), ()))                         # contract dim 1 of both
    eb_part = jax.lax.dot_general(x, e_w, dn, preferred_element_type=jnp.float32)
    vb_part = jax.lax.dot_general(x * x, var_w, dn,
                                  preferred_element_type=jnp.float32)

    # --- KL contribution of this weight tile (padding masked exactly) -------
    eps_c = 1e-8
    a_c = jnp.clip(alpha_q, eps_c, 1.0 - eps_c)
    kl_w_el = (alpha_q * (-jnp.log(w_sigma) - 0.5 + jnp.log(a_c * 4.0)
                          + 0.5 * (ws2 + wmu2))
               + one_m_a * jnp.log((1.0 - a_c) * (4.0 / 3.0)))
    if (n_padded != n_valid) or (k_padded != k_valid):
        rows = i * tile_n + jax.lax.broadcasted_iota(jnp.int32, (tile_n, tile_k), 0)
        cols = k * tile_k + jax.lax.broadcasted_iota(jnp.int32, (tile_n, tile_k), 1)
        kl_w_el = jnp.where((rows < n_valid) & (cols < k_valid), kl_w_el, 0.0)
    kl_w_tile = jnp.sum(kl_w_el)

    bmu = bmu_ref[...]                                    # (1, tile_n)
    brho = brho_ref[...]
    b_sigma = _stable_softplus(brho)

    @pl.when(k == 0)
    def _init():
        # Fold the bias terms straight into the accumulators.
        eb_acc[...] = jnp.broadcast_to(bmu, eb_acc.shape)
        vb_acc[...] = jnp.broadcast_to(b_sigma * b_sigma, vb_acc.shape)
        # Bias KL (once per N tile).
        kl_b_el = -jnp.log(b_sigma) - 0.5 + 0.5 * (b_sigma * b_sigma + bmu * bmu)
        if n_padded != n_valid:
            cols_b = i * tile_n + jax.lax.broadcasted_iota(jnp.int32, (1, tile_n), 1)
            kl_b_el = jnp.where(cols_b < n_valid, kl_b_el, 0.0)
        kl_acc[0] = jnp.sum(kl_b_el)

    eb_acc[...] += eb_part
    vb_acc[...] += vb_part
    kl_acc[0] += kl_w_tile

    @pl.when(k == nk - 1)
    def _finalize():
        out_ref[...] = (eb_acc[...]
                        + jnp.sqrt(vb_acc[...]) * eps_ref[...]).astype(out_ref.dtype)
        kl_ref[0, 0] = kl_acc[0]


# ----------------------------------------------------------------------------
# Wrapper: pads to lane-dense tiles, sets up the grid, slices the result.
# ----------------------------------------------------------------------------
def _round_up(x, m):
    return ((x + m - 1) // m) * m


def bayesian_linear_forward(x, params, eps, *, max_tile_n=512, max_tile_k=512):
    """Returns (activations (B, N), kl scalar). Training / sample=True path."""
    wmu = params["weight_mu"].astype(jnp.float32)
    wrho = params["weight_rho"].astype(jnp.float32)
    lam = params["lambdal"].astype(jnp.float32)
    bmu = params["bias_mu"].astype(jnp.float32)
    brho = params["bias_rho"].astype(jnp.float32)
    x = x.astype(jnp.float32)
    eps = eps.astype(jnp.float32)

    B, K = x.shape
    N = wmu.shape[0]

    # Lane-dense tiles: last dims multiples of 128, sublane dims multiples of 8.
    tile_n = max_tile_n if N > max_tile_n else _round_up(N, 128)
    tile_k = max_tile_k if K > max_tile_k else _round_up(K, 128)
    n_pad = _round_up(N, tile_n)
    k_pad = _round_up(K, tile_k)
    b_pad = _round_up(B, 8)

    def pad2(a, r, c):
        return jnp.pad(a, ((0, r - a.shape[0]), (0, c - a.shape[1])))

    xp = pad2(x, b_pad, k_pad)
    epsp = pad2(eps, b_pad, n_pad)
    wmup = pad2(wmu, n_pad, k_pad)
    wrhop = pad2(wrho, n_pad, k_pad)
    lamp = pad2(lam, n_pad, k_pad)
    bmup = pad2(bmu.reshape(1, N), 1, n_pad)
    brhop = pad2(brho.reshape(1, N), 1, n_pad)

    grid_n = n_pad // tile_n
    grid_k = k_pad // tile_k

    kernel = functools.partial(
        _bayes_linear_fused_kernel,
        n_valid=N, k_valid=K, n_padded=n_pad, k_padded=k_pad,
        tile_n=tile_n, tile_k=tile_k)

    out_padded, kl_parts = pl.pallas_call(
        kernel,
        out_shape=(
            jax.ShapeDtypeStruct((b_pad, n_pad), jnp.float32),
            jax.ShapeDtypeStruct((grid_n, 1), jnp.float32),
        ),
        grid_spec=pltpu.PrefetchScalarGridSpec(
            num_scalar_prefetch=0,
            grid=(grid_n, grid_k),
            in_specs=[
                pl.BlockSpec((b_pad, tile_k), lambda i, k: (0, k)),   # x
                pl.BlockSpec((tile_n, tile_k), lambda i, k: (i, k)),  # weight_mu
                pl.BlockSpec((tile_n, tile_k), lambda i, k: (i, k)),  # weight_rho
                pl.BlockSpec((tile_n, tile_k), lambda i, k: (i, k)),  # lambdal
                pl.BlockSpec((1, tile_n), lambda i, k: (0, i)),       # bias_mu
                pl.BlockSpec((1, tile_n), lambda i, k: (0, i)),       # bias_rho
                pl.BlockSpec((b_pad, tile_n), lambda i, k: (0, i)),   # eps
            ],
            out_specs=(
                pl.BlockSpec((b_pad, tile_n), lambda i, k: (0, i)),   # activations
                pl.BlockSpec((1, 1), lambda i, k: (i, 0),
                             memory_space=pltpu.MemorySpace.SMEM),    # KL partials
            ),
            scratch_shapes=[
                pltpu.VMEM((b_pad, tile_n), jnp.float32),  # e_b accumulator
                pltpu.VMEM((b_pad, tile_n), jnp.float32),  # var_b accumulator
                pltpu.SMEM((1,), jnp.float32),             # KL accumulator
            ],
        ),
        compiler_params=pltpu.CompilerParams(
            dimension_semantics=("parallel", "arbitrary"),
        ),
    )(xp, wmup, wrhop, lamp, bmup, brhop, epsp)

    return out_padded[:B, :N], jnp.sum(kl_parts)


# ----------------------------------------------------------------------------
# Pure-JAX reference (mirrors the PyTorch forward) for a correctness check.
# ----------------------------------------------------------------------------
def _reference(x, params, eps):
    wmu, wrho, lam = params["weight_mu"], params["weight_rho"], params["lambdal"]
    bmu, brho = params["bias_mu"], params["bias_rho"]
    alpha_q = 1.0 / (1.0 + jnp.exp(-lam))
    w_sigma = jnp.log1p(jnp.exp(wrho))
    b_sigma = jnp.log1p(jnp.exp(brho))
    e_w = wmu * alpha_q
    var_w = alpha_q * (w_sigma ** 2 + (1 - alpha_q) * wmu ** 2)
    e_b = x @ e_w.T + bmu
    var_b = (x ** 2) @ var_w.T + b_sigma ** 2
    act = e_b + jnp.sqrt(var_b) * eps
    kl_bias = jnp.sum(jnp.log(1.0 / b_sigma) - 0.5 + (b_sigma ** 2 + bmu ** 2) / 2.0)
    kl_weight = jnp.sum(
        alpha_q * (jnp.log(1.0 / w_sigma) - 0.5 + jnp.log(alpha_q / 0.25)
                   + (w_sigma ** 2 + wmu ** 2) / 2.0)
        + (1 - alpha_q) * jnp.log((1 - alpha_q) / 0.75))
    return act, kl_bias + kl_weight


def init_params(key, in_features, out_features):
    ks = jax.random.split(key, 5)
    u = functools.partial(jax.random.uniform, dtype=jnp.float32)
    return {
        "weight_mu": u(ks[0], (out_features, in_features), minval=-0.01, maxval=0.01),
        "weight_rho": u(ks[1], (out_features, in_features), minval=-5.0, maxval=-4.0),
        "lambdal": u(ks[2], (out_features, in_features), minval=0.0, maxval=1.0),
        "bias_mu": u(ks[3], (out_features,), minval=-0.01, maxval=0.01),
        "bias_rho": u(ks[4], (out_features,), minval=-5.0, maxval=-4.0),
    }


if __name__ == "__main__":
    B, K, N = 8, 32, 16   # batch, in_features, out_features

    key = jax.random.PRNGKey(0)
    kp, kx, ke = jax.random.split(key, 3)
    params = init_params(kp, K, N)
    x = jax.random.normal(kx, (B, K), dtype=jnp.float32)
    eps = jax.random.normal(ke, (B, N), dtype=jnp.float32)   # reparam noise

    act, kl = bayesian_linear_forward(x, params, eps)
    act = jax.block_until_ready(act)
    kl = jax.block_until_ready(kl)

    act_ref, kl_ref = _reference(x, params, eps)
    assert jnp.allclose(act, act_ref, atol=1e-5, rtol=1e-5), "activation mismatch"
    assert jnp.allclose(kl, kl_ref, atol=1e-2, rtol=1e-4), "kl mismatch"

    print("KERNEL_OK")
</pallas_src>

<mosaic_0001>
module attributes {stable_mosaic.version = 11 : i64} {
  func.func @_bayes_linear_fused_kernel(%arg0: i32, %arg1: i32, %arg2: memref<8x128xf32, #tpu.memory_space<vmem>>, %arg3: memref<128x128xf32, #tpu.memory_space<vmem>>, %arg4: memref<128x128xf32, #tpu.memory_space<vmem>>, %arg5: memref<128x128xf32, #tpu.memory_space<vmem>>, %arg6: memref<1x128xf32, #tpu.memory_space<vmem>>, %arg7: memref<1x128xf32, #tpu.memory_space<vmem>>, %arg8: memref<8x128xf32, #tpu.memory_space<vmem>>, %arg9: memref<8x128xf32, #tpu.memory_space<vmem>>, %arg10: memref<1x1xf32, #tpu.memory_space<smem>>, %arg11: memref<8x128xf32, #tpu.memory_space<vmem>>, %arg12: memref<8x128xf32, #tpu.memory_space<vmem>>, %arg13: memref<1xf32, #tpu.memory_space<smem>>) attributes {dimension_semantics = [#tpu.dimension_semantics<parallel>, #tpu.dimension_semantics<arbitrary>], iteration_bounds = array<i64: 1, 1>, scalar_prefetch = 0 : i64, scratch_operands = 3 : i64, tpu.core_type = #tpu.core_type<tc>, window_params = [{transform_indices = @transform_0, window_bounds = array<i64: 8, 128>}, {transform_indices = @transform_1, window_bounds = array<i64: 128, 128>}, {transform_indices = @transform_2, window_bounds = array<i64: 128, 128>}, {transform_indices = @transform_3, window_bounds = array<i64: 128, 128>}, {transform_indices = @transform_4, window_bounds = array<i64: 1, 128>}, {transform_indices = @transform_5, window_bounds = array<i64: 1, 128>}, {transform_indices = @transform_6, window_bounds = array<i64: 8, 128>}, {transform_indices = @transform_7, window_bounds = array<i64: 8, 128>}, {transform_indices = @transform_8, window_bounds = array<i64: 1, 1>}]} {
    %c0 = arith.constant 0 : index
    %c0_0 = arith.constant 0 : index
    %0 = vector.load %arg3[%c0, %c0_0] : memref<128x128xf32, #tpu.memory_space<vmem>>, vector<128x128xf32>
    %c0_1 = arith.constant 0 : index
    %c0_2 = arith.constant 0 : index
    %1 = vector.load %arg4[%c0_1, %c0_2] : memref<128x128xf32, #tpu.memory_space<vmem>>, vector<128x128xf32>
    %c0_3 = arith.constant 0 : index
    %c0_4 = arith.constant 0 : index
    %2 = vector.load %arg5[%c0_3, %c0_4] : memref<128x128xf32, #tpu.memory_space<vmem>>, vector<128x128xf32>
    %cst = arith.constant 5.000000e-01 : f32
    %3 = vector.broadcast %cst : f32 to vector<128x128xf32>
    %4 = arith.mulf %3, %2 : vector<128x128xf32>
    %5 = math.tanh %4 : vector<128x128xf32>
    %cst_5 = arith.constant 5.000000e-01 : f32
    %6 = vector.broadcast %cst_5 : f32 to vector<128x128xf32>
    %7 = arith.mulf %6, %5 : vector<128x128xf32>
    %cst_6 = arith.constant 5.000000e-01 : f32
    %8 = vector.broadcast %cst_6 : f32 to vector<128x128xf32>
    %9 = arith.addf %7, %8 : vector<128x128xf32>
    %cst_7 = arith.constant 1.000000e+00 : f32
    %10 = vector.broadcast %cst_7 : f32 to vector<128x128xf32>
    %11 = arith.subf %10, %9 : vector<128x128xf32>
    %cst_8 = arith.constant 0.000000e+00 : f32
    %12 = vector.broadcast %cst_8 : f32 to vector<128x128xf32>
    %13 = arith.maximumf %1, %12 : vector<128x128xf32>
    %14 = math.absf %1 : vector<128x128xf32>
    %cst_9 = arith.constant 0.000000e+00 : f32
    %15 = vector.broadcast %cst_9 : f32 to vector<128x128xf32>
    %16 = arith.subf %15, %14 : vector<128x128xf32>
    %17 = math.exp %16 : vector<128x128xf32>
    %18 = math.log1p %17 : vector<128x128xf32>
    %19 = arith.addf %13, %18 : vector<128x128xf32>
    %20 = arith.mulf %19, %19 : vector<128x128xf32>
    %21 = arith.mulf %0, %0 : vector<128x128xf32>
    %22 = arith.mulf %0, %9 : vector<128x128xf32>
    %23 = arith.mulf %11, %21 : vector<128x128xf32>
    %24 = arith.addf %20, %23 : vector<128x128xf32>
    %25 = arith.mulf %9, %24 : vector<128x128xf32>
    %c0_10 = arith.constant 0 : index
    %c0_11 = arith.constant 0 : index
    %26 = vector.load %arg2[%c0_10, %c0_11] : memref<8x128xf32, #tpu.memory_space<vmem>>, vector<8x128xf32>
    %cst_12 = arith.constant dense<0.000000e+00> : vector<8x128xf32>
    %27 = tpu.matmul %26, %22, %cst_12 {dimension_numbers = #tpu.dot_dimension_numbers<[1], [1], [0], [0], [0, 0, 1, 0], [], []>} : vector<8x128xf32>, vector<128x128xf32>, vector<8x128xf32> -> vector<8x128xf32>
    %28 = arith.mulf %26, %26 : vector<8x128xf32>
    %cst_13 = arith.constant dense<0.000000e+00> : vector<8x128xf32>
    %29 = tpu.matmul %28, %25, %cst_13 {dimension_numbers = #tpu.dot_dimension_numbers<[1], [1], [0], [0], [0, 0, 1, 0], [], []>} : vector<8x128xf32>, vector<128x128xf32>, vector<8x128xf32> -> vector<8x128xf32>
    %cst_14 = arith.constant 9.99999993E-9 : f32
    %cst_15 = arith.constant 1.000000e+00 : f32
    %30 = vector.broadcast %cst_14 : f32 to vector<128x128xf32>
    %31 = arith.maximumf %30, %9 : vector<128x128xf32>
    %32 = vector.broadcast %cst_15 : f32 to vector<128x128xf32>
    %33 = arith.minimumf %32, %31 : vector<128x128xf32>
    %34 = math.log %19 : vector<128x128xf32>
    %cst_16 = arith.constant 0.000000e+00 : f32
    %35 = vector.broadcast %cst_16 : f32 to vector<128x128xf32>
    %36 = arith.subf %35, %34 : vector<128x128xf32>
    %cst_17 = arith.constant 5.000000e-01 : f32
    %37 = vector.broadcast %cst_17 : f32 to vector<128x128xf32>
    %38 = arith.subf %36, %37 : vector<128x128xf32>
    %cst_18 = arith.constant 4.000000e+00 : f32
    %39 = vector.broadcast %cst_18 : f32 to vector<128x128xf32>
    %40 = arith.mulf %33, %39 : vector<128x128xf32>
    %41 = math.log %40 : vector<128x128xf32>
    %42 = arith.addf %38, %41 : vector<128x128xf32>
    %43 = arith.addf %20, %21 : vector<128x128xf32>
    %cst_19 = arith.constant 5.000000e-01 : f32
    %44 = vector.broadcast %cst_19 : f32 to vector<128x128xf32>
    %45 = arith.mulf %44, %43 : vector<128x128xf32>
    %46 = arith.addf %42, %45 : vector<128x128xf32>
    %47 = arith.mulf %9, %46 : vector<128x128xf32>
    %cst_20 = arith.constant 1.000000e+00 : f32
    %48 = vector.broadcast %cst_20 : f32 to vector<128x128xf32>
    %49 = arith.subf %48, %33 : vector<128x128xf32>
    %cst_21 = arith.constant 1.33333337 : f32
    %50 = vector.broadcast %cst_21 : f32 to vector<128x128xf32>
    %51 = arith.mulf %49, %50 : vector<128x128xf32>
    %52 = math.log %51 : vector<128x128xf32>
    %53 = arith.mulf %11, %52 : vector<128x128xf32>
    %54 = arith.addf %47, %53 : vector<128x128xf32>
    %c128_i32 = arith.constant 128 : i32
    %55 = arith.muli %arg0, %c128_i32 : i32
    %56 = tpu.iota {dimensions = array<i32: 0>} : vector<128x128xi32>
    %57 = vector.broadcast %55 : i32 to vector<128x128xi32>
    %58 = arith.addi %57, %56 : vector<128x128xi32>
    %c128_i32_22 = arith.constant 128 : i32
    %59 = arith.muli %arg1, %c128_i32_22 : i32
    %60 = tpu.iota {dimensions = array<i32: 1>} : vector<128x128xi32>
    %61 = vector.broadcast %59 : i32 to vector<128x128xi32>
    %62 = arith.addi %61, %60 : vector<128x128xi32>
    %c16_i32 = arith.constant 16 : i32
    %63 = vector.broadcast %c16_i32 : i32 to vector<128x128xi32>
    %64 = arith.cmpi slt, %58, %63 : vector<128x128xi32>
    %c32_i32 = arith.constant 32 : i32
    %65 = vector.broadcast %c32_i32 : i32 to vector<128x128xi32>
    %66 = arith.cmpi slt, %62, %65 : vector<128x128xi32>
    %67 = arith.andi %64, %66 : vector<128x128xi1>
    %cst_23 = arith.constant 0.000000e+00 : f32
    %68 = vector.broadcast %cst_23 : f32 to vector<128x128xf32>
    %69 = arith.select %67, %54, %68 : vector<128x128xi1>, vector<128x128xf32>
    %70 = vector.shape_cast %69 : vector<128x128xf32> to vector<1x128x128xf32>
    %cst_24 = arith.constant dense<0.000000e+00> : vector<1xf32>
    %71 = vector.multi_reduction <add>, %70, %cst_24 [1, 2] : vector<1x128x128xf32> to vector<1xf32>
    %72 = vector.shape_cast %71 : vector<1xf32> to vector<1x1x1xf32>
    %73 = vector.extract %72[0, 0, 0] : f32 from vector<1x1x1xf32>
    %c0_25 = arith.constant 0 : index
    %c0_26 = arith.constant 0 : index
    %74 = vector.load %arg6[%c0_25, %c0_26] : memref<1x128xf32, #tpu.memory_space<vmem>>, vector<1x128xf32>
    %c0_27 = arith.constant 0 : index
    %c0_28 = arith.constant 0 : index
    %75 = vector.load %arg7[%c0_27, %c0_28] : memref<1x128xf32, #tpu.memory_space<vmem>>, vector<1x128xf32>
    %cst_29 = arith.constant 0.000000e+00 : f32
    %76 = vector.broadcast %cst_29 : f32 to vector<1x128xf32>
    %77 = arith.maximumf %75, %76 : vector<1x128xf32>
    %78 = math.absf %75 : vector<1x128xf32>
    %cst_30 = arith.constant 0.000000e+00 : f32
    %79 = vector.broadcast %cst_30 : f32 to vector<1x128xf32>
    %80 = arith.subf %79, %78 : vector<1x128xf32>
    %81 = math.exp %80 : vector<1x128xf32>
    %82 = math.log1p %81 : vector<1x128xf32>
    %83 = arith.addf %77, %82 : vector<1x128xf32>
    %c0_i32 = arith.constant 0 : i32
    %84 = arith.cmpi eq, %arg1, %c0_i32 : i32
    %85 = arith.extui %84 : i1 to i32
    %c0_i32_31 = arith.constant 0 : i32
    %86 = arith.cmpi ne, %85, %c0_i32_31 : i32
    scf.if %86 {
      %99 = vector.shape_cast %74 : vector<1x128xf32> to vector<1x128xf32>
      %100 = vector.broadcast %99 : vector<1x128xf32> to vector<8x128xf32>
      %c0_44 = arith.constant 0 : index
      %c0_45 = arith.constant 0 : index
      %101 = vector.load %arg11[%c0_44, %c0_45] : memref<8x128xf32, #tpu.memory_space<vmem>>, vector<8x128xf32>
      tpu.vector_store %arg11[%c0_44, %c0_45], %100 {strides = array<i32>} : memref<8x128xf32, #tpu.memory_space<vmem>>, vector<8x128xf32>,
      %102 = arith.mulf %83, %83 : vector<1x128xf32>
      %103 = vector.shape_cast %102 : vector<1x128xf32> to vector<1x128xf32>
      %104 = vector.broadcast %103 : vector<1x128xf32> to vector<8x128xf32>
      %c0_46 = arith.constant 0 : index
      %c0_47 = arith.constant 0 : index
      %105 = vector.load %arg12[%c0_46, %c0_47] : memref<8x128xf32, #tpu.memory_space<vmem>>, vector<8x128xf32>
      tpu.vector_store %arg12[%c0_46, %c0_47], %104 {strides = array<i32>} : memref<8x128xf32, #tpu.memory_space<vmem>>, vector<8x128xf32>,
      %106 = math.log %83 : vector<1x128xf32>
      %cst_48 = arith.constant 0.000000e+00 : f32
      %107 = vector.broadcast %cst_48 : f32 to vector<1x128xf32>
      %108 = arith.subf %107, %106 : vector<1x128xf32>
      %cst_49 = arith.constant 5.000000e-01 : f32
      %109 = vector.broadcast %cst_49 : f32 to vector<1x128xf32>
      %110 = arith.subf %108, %109 : vector<1x128xf32>
      %111 = arith.mulf %83, %83 : vector<1x128xf32>
      %112 = arith.mulf %74, %74 : vector<1x128xf32>
      %113 = arith.addf %111, %112 : vector<1x128xf32>
      %cst_50 = arith.constant 5.000000e-01 : f32
      %114 = vector.broadcast %cst_50 : f32 to vector<1x128xf32>
      %115 = arith.mulf %114, %113 : vector<1x128xf32>
      %116 = arith.addf %110, %115 : vector<1x128xf32>
      %c128_i32_51 = arith.constant 128 : i32
      %117 = arith.muli %arg0, %c128_i32_51 : i32
      %118 = tpu.iota {dimensions = array<i32: 1>} : vector<1x128xi32>
      %119 = vector.broadcast %117 : i32 to vector<1x128xi32>
      %120 = arith.addi %119, %118 : vector<1x128xi32>
      %c16_i32_52 = arith.constant 16 : i32
      %121 = vector.broadcast %c16_i32_52 : i32 to vector<1x128xi32>
      %122 = arith.cmpi slt, %120, %121 : vector<1x128xi32>
      %cst_53 = arith.constant 0.000000e+00 : f32
      %123 = vector.broadcast %cst_53 : f32 to vector<1x128xf32>
      %124 = arith.select %122, %116, %123 : vector<1x128xi1>, vector<1x128xf32>
      %125 = vector.shape_cast %124 : vector<1x128xf32> to vector<1x1x128xf32>
      %cst_54 = arith.constant dense<0.000000e+00> : vector<1xf32>
      %126 = vector.multi_reduction <add>, %125, %cst_54 [1, 2] : vector<1x1x128xf32> to vector<1xf32>
      %127 = vector.shape_cast %126 : vector<1xf32> to vector<1x1x1xf32>
      %128 = vector.extract %127[0, 0, 0] : f32 from vector<1x1x1xf32>
      %c0_55 = arith.constant 0 : index
      %129 = memref.load %arg13[%c0_55] : memref<1xf32, #tpu.memory_space<smem>>
      memref.store %128, %arg13[%c0_55] : memref<1xf32, #tpu.memory_space<smem>>
    } else {
    }
    %c0_32 = arith.constant 0 : index
    %c0_33 = arith.constant 0 : index
    %87 = vector.load %arg11[%c0_32, %c0_33] : memref<8x128xf32, #tpu.memory_space<vmem>>, vector<8x128xf32>
    %88 = arith.addf %87, %27 : vector<8x128xf32>
    %c0_34 = arith.constant 0 : index
    %c0_35 = arith.constant 0 : index
    %89 = vector.load %arg11[%c0_34, %c0_35] : memref<8x128xf32, #tpu.memory_space<vmem>>, vector<8x128xf32>
    tpu.vector_store %arg11[%c0_34, %c0_35], %88 {strides = array<i32>} : memref<8x128xf32, #tpu.memory_space<vmem>>, vector<8x128xf32>,
    %c0_36 = arith.constant 0 : index
    %c0_37 = arith.constant 0 : index
    %90 = vector.load %arg12[%c0_36, %c0_37] : memref<8x128xf32, #tpu.memory_space<vmem>>, vector<8x128xf32>
    %91 = arith.addf %90, %29 : vector<8x128xf32>
    %c0_38 = arith.constant 0 : index
    %c0_39 = arith.constant 0 : index
    %92 = vector.load %arg12[%c0_38, %c0_39] : memref<8x128xf32, #tpu.memory_space<vmem>>, vector<8x128xf32>
    tpu.vector_store %arg12[%c0_38, %c0_39], %91 {strides = array<i32>} : memref<8x128xf32, #tpu.memory_space<vmem>>, vector<8x128xf32>,
    %c0_40 = arith.constant 0 : index
    %93 = memref.load %arg13[%c0_40] : memref<1xf32, #tpu.memory_space<smem>>
    %94 = arith.addf %93, %73 : f32
    %c0_41 = arith.constant 0 : index
    %95 = memref.load %arg13[%c0_41] : memref<1xf32, #tpu.memory_space<smem>>
    memref.store %94, %arg13[%c0_41] : memref<1xf32, #tpu.memory_space<smem>>
    %c0_i32_42 = arith.constant 0 : i32
    %96 = arith.cmpi eq, %arg1, %c0_i32_42 : i32
    %97 = arith.extui %96 : i1 to i32
    %c0_i32_43 = arith.constant 0 : i32
    %98 = arith.cmpi ne, %97, %c0_i32_43 : i32
    scf.if %98 {
      %c0_44 = arith.constant 0 : index
      %c0_45 = arith.constant 0 : index
      %99 = vector.load %arg11[%c0_44, %c0_45] : memref<8x128xf32, #tpu.memory_space<vmem>>, vector<8x128xf32>
      %c0_46 = arith.constant 0 : index
      %c0_47 = arith.constant 0 : index
      %100 = vector.load %arg12[%c0_46, %c0_47] : memref<8x128xf32, #tpu.memory_space<vmem>>, vector<8x128xf32>
      %101 = math.sqrt %100 : vector<8x128xf32>
      %c0_48 = arith.constant 0 : index
      %c0_49 = arith.constant 0 : index
      %102 = vector.load %arg8[%c0_48, %c0_49] : memref<8x128xf32, #tpu.memory_space<vmem>>, vector<8x128xf32>
      %103 = arith.mulf %101, %102 : vector<8x128xf32>
      %104 = arith.addf %99, %103 : vector<8x128xf32>
      %c0_50 = arith.constant 0 : index
      %c0_51 = arith.constant 0 : index
      %105 = vector.load %arg9[%c0_50, %c0_51] : memref<8x128xf32, #tpu.memory_space<vmem>>, vector<8x128xf32>
      tpu.vector_store %arg9[%c0_50, %c0_51], %104 {strides = array<i32>} : memref<8x128xf32, #tpu.memory_space<vmem>>, vector<8x128xf32>,
      %c0_52 = arith.constant 0 : index
      %106 = memref.load %arg13[%c0_52] : memref<1xf32, #tpu.memory_space<smem>>
      %c0_53 = arith.constant 0 : index
      %c0_54 = arith.constant 0 : index
      %107 = memref.load %arg10[%c0_53, %c0_54] : memref<1x1xf32, #tpu.memory_space<smem>>
      memref.store %106, %arg10[%c0_53, %c0_54] : memref<1x1xf32, #tpu.memory_space<smem>>
    } else {
    }
    return
  }
  func.func @transform_0(%arg0: i32, %arg1: i32) -> (i32, i32) {
    %c0_i32 = arith.constant 0 : i32
    %c0_i32_0 = arith.constant 0 : i32
    return %c0_i32, %arg1 : i32, i32
  }
  func.func @transform_1(%arg0: i32, %arg1: i32) -> (i32, i32) {
    %c0_i32 = arith.constant 0 : i32
    return %arg0, %arg1 : i32, i32
  }
  func.func @transform_2(%arg0: i32, %arg1: i32) -> (i32, i32) {
    %c0_i32 = arith.constant 0 : i32
    return %arg0, %arg1 : i32, i32
  }
  func.func @transform_3(%arg0: i32, %arg1: i32) -> (i32, i32) {
    %c0_i32 = arith.constant 0 : i32
    return %arg0, %arg1 : i32, i32
  }
  func.func @transform_4(%arg0: i32, %arg1: i32) -> (i32, i32) {
    %c0_i32 = arith.constant 0 : i32
    %c0_i32_0 = arith.constant 0 : i32
    return %c0_i32, %arg0 : i32, i32
  }
  func.func @transform_5(%arg0: i32, %arg1: i32) -> (i32, i32) {
    %c0_i32 = arith.constant 0 : i32
    %c0_i32_0 = arith.constant 0 : i32
    return %c0_i32, %arg0 : i32, i32
  }
  func.func @transform_6(%arg0: i32, %arg1: i32) -> (i32, i32) {
    %c0_i32 = arith.constant 0 : i32
    %c0_i32_0 = arith.constant 0 : i32
    return %c0_i32, %arg0 : i32, i32
  }
  func.func @transform_7(%arg0: i32, %arg1: i32) -> (i32, i32) {
    %c0_i32 = arith.constant 0 : i32
    %c0_i32_0 = arith.constant 0 : i32
    return %c0_i32, %arg0 : i32, i32
  }
  func.func @transform_8(%arg0: i32, %arg1: i32) -> (i32, i32) {
    %c0_i32 = arith.constant 0 : i32
    %c0_i32_0 = arith.constant 0 : i32
    return %arg0, %c0_i32 : i32, i32
  }
}

</mosaic_0001>

<bundles_post_ra>
// kernel: tpu_custom_call.1
= control target key start
LH: loop header
LB: loop body
LE: loop exit
PB: predicated region body
PF: predicated region fallthrough
CT: control target
= control target key end

     0   :  { %14 = vsyncpa [#allocation6], 0  ;;  %s2191_s0 = inlined_call_operand.hbm [shape: f32[8,128], index: 0, kind: input, shape index: {}]   ;;  %s2192_s1 = inlined_call_operand.hbm [shape: f32[128,128], index: 1, kind: input, shape index: {}]   ;;  %s2193_s2 = inlined_call_operand.hbm [shape: f32[128,128], index: 2, kind: input, shape index: {}]   ;;  %s2194_s3 = inlined_call_operand.hbm [shape: f32[128,128], index: 3, kind: input, shape index: {}]   ;;  %s2195_s4 = inlined_call_operand.vmem [shape: f32[1,128], index: 4, kind: input, shape index: {}]   ;;  %s2196_s5 = inlined_call_operand.vmem [shape: f32[1,128], index: 5, kind: input, shape index: {}]   ;;  %s2197_s6 = inlined_call_operand.vmem [shape: f32[8,128], index: 6, kind: input, shape index: {}]   ;;  %s2198_s7 = inlined_call_operand.hbm [shape: f32[8,128], index: 7, kind: output, shape index: {0}]   ;;  %s2199_s8 = inlined_call_operand.hbm [shape: f32[1,1], index: 8, kind: output, shape index: {1}]  }
   0x1   :  { %15 = vsyncpa [#allocation10], 0 }
   0x2   :  { %16 = vsyncpa [#allocation13], 0 }
   0x3   :  { %17 = vsyncpa [#allocation7], 0 }
   0x4   :  { %18 = vsyncpa [#allocation8], 0  ;;  %s1610_s27 = smov [#allocation9]  }
   0x5   :  { %s34_s28 = sshll.u32 %s1610_s27, 4  ;;  %s35_s28 = int_to_ptr.vmem [resolvable:$true] %s34_s28 }
   0x6   :  { %s1500_s29 = scalar_lea.vmem %s35_s28, 2048  ;;  %p1505_p1 = scmp.lt.s32.totalorder %s35_s28, %s35_s28 }
   0x7   :  { %p1501_p0 = scmp.ne.s32.totalorder %s35_s28, %s1500_s29  ;;  %p1506_p2 = scmp.lt.s32.totalorder %s1500_s29, %s1500_s29 }
   0x9   :  { %p1507_p3 = por %p1506_p2, %p1505_p1 }
   0xb   :  { %p1508_p4 = pnand %p1507_p3, %p1501_p0 }
   0xd   :  { %1511 = shalt.err (!%p1508_p4)
}
   0xe   :  { %s1611_s30 = smov 128   ;;  %s1612_s9 = smov 8  }
   0xf   :  { %40 = dma.hbm_to_vmem [thread:$0]  %s2192_s1, 2048, %s35_s28, [#allocation10], %s1611_s30, %s1611_s30, %s1612_s9  }
  0x10   :  { %s1613_s12 = smov [#allocation5]   ;;  %s1614_s14 = smov [#allocation11]  }
  0x11   :  { %s25_s13 = sshll.u32 %s1613_s12, 4  ;;  %s46_s15 = sshll.u32 %s1614_s14, 4  ;;  %s26_s13 = int_to_ptr.vmem [resolvable:$true] %s25_s13  ;;  %s47_s15 = int_to_ptr.vmem [resolvable:$true] %s46_s15 }
  0x12   :  { %s1520_s16 = scalar_lea.vmem %s26_s13, 128  ;;  %p1525_p6 = scmp.lt.s32.totalorder %s26_s13, %s26_s13 }
  0x13   :  { %p1521_p5 = scmp.ne.s32.totalorder %s26_s13, %s1520_s16  ;;  %p1526_p7 = scmp.lt.s32.totalorder %s1520_s16, %s1520_s16 }
  0x15   :  { %p1527_p8 = por %p1526_p7, %p1525_p6 }
  0x17   :  { %p1528_p9 = pnand %p1527_p8, %p1521_p5 }
  0x19   :  { %1531 = shalt.err (!%p1528_p9)
}
  0x1a   :  { %28 = dma.hbm_to_vmem [thread:$0]  %s2191_s0, 128, %s26_s13, [#allocation6]  }
  0x1b   :  { %s1540_s19 = scalar_lea.vmem %s47_s15, 2048  ;;  %p1545_p11 = scmp.lt.s32.totalorder %s47_s15, %s47_s15 }
  0x1c   :  { %p1541_p10 = scmp.ne.s32.totalorder %s47_s15, %s1540_s19  ;;  %p1546_p12 = scmp.lt.s32.totalorder %s1540_s19, %s1540_s19 }
  0x1e   :  { %p1547_p13 = por %p1546_p12, %p1545_p11 }
  0x20   :  { %p1548_p0 = pnand %p1547_p13, %p1541_p10 }
  0x22   :  { %1551 = shalt.err (!%p1548_p0)
}
  0x23   :  { %52 = dma.hbm_to_vmem [thread:$0]  %s2193_s2, 2048, %s47_s15, [#allocation10], %s1611_s30, %s1611_s30, %s1612_s9  }
  0x24   :  { %s1615_s21 = smov [#allocation12]  }
  0x25   :  { %s58_s22 = sshll.u32 %s1615_s21, 4  ;;  %s59_s22 = int_to_ptr.vmem [resolvable:$true] %s58_s22 }
  0x26   :  { %s1560_s23 = scalar_lea.vmem %s59_s22, 2048  ;;  %p1565_p2 = scmp.lt.s32.totalorder %s59_s22, %s59_s22 }
  0x27   :  { %p1561_p1 = scmp.ne.s32.totalorder %s59_s22, %s1560_s23  ;;  %p1566_p3 = scmp.lt.s32.totalorder %s1560_s23, %s1560_s23 }
  0x29   :  { %p1567_p4 = por %p1566_p3, %p1565_p2 }
  0x2b   :  { %p1568_p5 = pnand %p1567_p4, %p1561_p1 }
  0x2d   :  { %1571 = shalt.err (!%p1568_p5)
}
  0x2e   :  { %64 = dma.hbm_to_vmem [thread:$0]  %s2194_s3, 2048, %s59_s22, [#allocation13], %s1611_s30, %s1611_s30, %s1612_s9  }
  0x2f   :  { %1600 = dma.done.wait [#allocation6], 128  }
  0x30   :  { %1601 = vsyncadd [#allocation6], 4294967168 }
  0x31   :  { %1602 = dma.done.wait [#allocation10], 4096  }
  0x32   :  { %1603 = vsyncadd [#allocation10], 4294963200 }
  0x33   :  { %1604 = dma.done.wait [#allocation13], 2048  }
  0x34   :  { %1605 = vsyncadd [#allocation13], 4294965248  ;;  %v2200_v0 = vmov 0.0   ;;  %v1688_v1 = vld [vmem:[#allocation11 + $0x78] sm:$0xff]  ;;  %v1691_v5 = vld [vmem:[#allocation11 + $0x70] sm:$0xff]  ;;  %vm1617_vm11 = vmmov 0  }
  0x35   :  { %1327 = vmatprep.subr.mxu1 %v2200_v0  ;;  %1292 = vmatprep.subr.mxu0 %v2200_v0  ;;  %v130_v2 = vld [vmem:[#allocation12 + $0x78] sm:$0xff]  ;;  %v242_v4 = vand.u32 2147483647, %v1688_v1  ;;  %v129_v6 = vld [vmem:[#allocation12 + $0x70] sm:$0xff]  ;;  %v241_v7 = vand.u32 2147483647, %v1691_v5 }
  0x36   :  { %v146_v3 = vmul.f32 0.5, %v130_v2  ;;  %v1694_v8 = vld [vmem:[#allocation11 + $0x68] sm:$0xff]  ;;  %v145_v10 = vmul.f32 0.5, %v129_v6  ;;  %v1696_v12 = vld [vmem:[#allocation11 + $0x60] sm:$0xff]  ;;  %v1699_v19 = vld [vmem:[#allocation11 + $0x58] sm:$0xff]  ;;  %s1618_s27 = smov [#allocation14]  }
  0x37   :  { %v258_v9 = vsub.f32 0.0, %v242_v4  ;;  %v128_v11 = vld [vmem:[#allocation12 + $0x68] sm:$0xff]  ;;  %v257_v13 = vsub.f32 0.0, %v241_v7  ;;  %v240_v15 = vand.u32 2147483647, %v1694_v8  ;;  %v127_v16 = vld [vmem:[#allocation12 + $0x60] sm:$0xff] }
  0x38   :  { %1376 = vtanh.f32 %v146_v3  ;;  %v144_v14 = vmul.f32 0.5, %v128_v11  ;;  %v143_v18 = vmul.f32 0.5, %v127_v16  ;;  %v239_v22 = vand.u32 2147483647, %v1696_v12  ;;  %v126_v23 = vld [vmem:[#allocation12 + $0x58] sm:$0xff]  ;;  %v1702_v24 = vld [vmem:[#allocation11 + $0x50] sm:$0xff] }
  0x39   :  { %v289_v17 = vmul.f32 1.442695, %v258_v9  ;;  %1378 = vtanh.f32 %v145_v10  ;;  %v287_v20 = vmul.f32 1.442695, %v257_v13  ;;  %v256_v21 = vsub.f32 0.0, %v240_v15  ;;  %v1705_v29 = vld [vmem:[#allocation11 + $0x48] sm:$0xff] }
  0x3a   :  { %1380 = vtanh.f32 %v144_v14  ;;  %v255_v26 = vsub.f32 0.0, %v239_v22  ;;  %v238_v27 = vand.u32 2147483647, %v1699_v19  ;;  %v142_v28 = vmul.f32 0.5, %v126_v23  ;;  %v125_v32 = vld [vmem:[#allocation12 + $0x50] sm:$0xff]  ;;  %v1708_v34 = vld [vmem:[#allocation9 + $0x78] sm:$0xff] }
  0x3b   :  { %1382 = vpow2.f32 %v289_v17  ;;  %v285_v25 = vmul.f32 1.442695, %v256_v21  ;;  %v237_v33 = vand.u32 2147483647, %v1702_v24  ;;  %v1710_v35 = vld [vmem:[#allocation9 + $0x70] sm:$0xff]  ;;  %v1712_v36 = vld [vmem:[#allocation11 + $0x40] sm:$0xff]  ;;  %v1721_v48 = vmul.f32 %v1708_v34, %v1708_v34 }
  0x3c   :  { %1384 = vpow2.f32 %v287_v20  ;;  %v283_v30 = vmul.f32 1.442695, %v255_v26  ;;  %v254_v31 = vsub.f32 0.0, %v238_v27  ;;  %v124_v39 = vld [vmem:[#allocation12 + $0x48] sm:$0xff]  ;;  %v236_v40 = vand.u32 2147483647, %v1705_v29 }
  0x3d   :  { %1386 = vtanh.f32 %v143_v18  ;;  %v253_v38 = vsub.f32 0.0, %v237_v33  ;;  %v1716_v42 = vld [vmem:[#allocation9 + $0x68] sm:$0xff]  ;;  %v141_v43 = vmul.f32 0.5, %v125_v32  ;;  %v123_v46 = vld [vmem:[#allocation12 + $0x40] sm:$0xff]  ;;  %v235_v47 = vand.u32 2147483647, %v1712_v36 }
  0x3e   :  { %1388 = vpow2.f32 %v285_v25  ;;  %v281_v37 = vmul.f32 1.442695, %v254_v31  ;;  %v252_v45 = vsub.f32 0.0, %v236_v40  ;;  %v1726_v50 = vmul.f32 %v1710_v35, %v1710_v35  ;;  %v1728_v51 = vld [vmem:[#allocation9 + $0x60] sm:$0xff]  ;;  %v122_v53 = vld [vmem:[#allocation12 + $0x38] sm:$0xff]  ;;  %v1740_v62 = vld [vmem:[#allocation9 + $0x50] sm:$0xff] }
  0x3f   :  { %1390 = vpow2.f32 %v283_v30  ;;  %v279_v44 = vmul.f32 1.442695, %v253_v38  ;;  %v140_v52 = vmul.f32 0.5, %v124_v39  ;;  %v1733_v56 = vmul.f32 %v1716_v42, %v1716_v42  ;;  %v1736_v58 = vld [vmem:[#allocation9 + $0x58] sm:$0xff]  ;;  %v1747_v7 = vld [vmem:[#allocation9 + $0x48] sm:$0xff]  ;;  %v1762_v20 = vld [vmem:[#allocation9 + $0x40] sm:$0xff] }
  0x40   :  { %1392 = vtanh.f32 %v142_v28  ;;  %v277_v59 = vmul.f32 1.442695, %v252_v45  ;;  %v1738_v60 = vld [vmem:[#allocation11 + $0x38] sm:$0xff]  ;;  %v139_v63 = vmul.f32 0.5, %v123_v46  ;;  %v251_v2 = vsub.f32 0.0, %v235_v47  ;;  %v1772_v31 = vld [vmem:[#allocation11 + $0x30] sm:$0xff] }
  0x41   :  { %1394 = vpow2.f32 %v281_v37  ;;  %2203 = vst [vmem:[#allocation21_spill] sm:$0xff] %v1738_v60  ;;  %v1744_v4 = vmul.f32 %v1728_v51, %v1728_v51  ;;  %v138_v9 = vmul.f32 0.5, %v122_v53  ;;  %v1751_v11 = vmul.f32 %v1736_v58, %v1736_v58  ;;  %v121_v32 = vld [vmem:[#allocation12 + $0x30] sm:$0xff]  ;;  %s1217_s28 = sshll.u32 %s1618_s27, 4  ;;  %s1218_s28 = int_to_ptr.vmem [resolvable:$true] %s1217_s28 }
  0x42   :  { %1396 = vpow2.f32 %v279_v44  ;;  %v234_v14 = vand.u32 2147483647, %v1738_v60  ;;  %v1759_v17 = vmul.f32 %v1740_v62, %v1740_v62  ;;  %v1768_v23 = vmul.f32 %v1747_v7, %v1747_v7  ;;  %s1572_s29 = scalar_lea.vmem %s1218_s28, 128  ;;  %p1577_p7 = scmp.lt.s32.totalorder %s1218_s28, %s1218_s28 }
  0x43   :  { %1398 = vtanh.f32 %v141_v43  ;;  %v275_v25 = vmul.f32 1.442695, %v251_v2  ;;  %v1776_v38 = vmul.f32 %v1762_v20, %v1762_v20  ;;  %v1779_v47 = vmul.f32 0.5, %v121_v32  ;;  %p1573_p6 = scmp.ne.s32.totalorder %s1218_s28, %s1572_s29  ;;  %p1578_p8 = scmp.lt.s32.totalorder %s1572_s29, %s1572_s29 }
  0x44   :  { %1400 = vtanh.f32 %v140_v52  ;;  %v250_v39 = vsub.f32 0.0, %v234_v14 }
  0x45   :  { %v1377_v54 = vpop.eup %1376  ;;  %1402 = vpow2.f32 %v277_v59  ;;  %p1579_p9 = por %p1578_p8, %p1577_p7 }
  0x46   :  { %v178_v61 = vmul.f32 0.5, %v1377_v54  ;;  %v1379_v3 = vpop.eup %1378  ;;  %1404 = vtanh.f32 %v139_v63 }
  0x47   :  { %v1381_v10 = vpop.eup %1380  ;;  %v177_v27 = vmul.f32 0.5, %v1379_v3  ;;  %1406 = vtanh.f32 %v138_v9  ;;  %p1580_p10 = pnand %p1579_p9, %p1573_p6 }
  0x48   :  { %v1383_v15 = vpop.eup %1382  ;;  %v1755_v16 = vadd.f32 0.5, %v178_v61  ;;  %v176_v44 = vmul.f32 0.5, %v1381_v10 }
  0x49   :  { %v1764_v21 = vpop.eup %1384  ;;  %v426_v22 = vadd.f32 1.0, %v1383_v15  ;;  %v429_v37 = vmul.f32 -0.5, %v1383_v15  ;;  %v432_v43 = vand.u32 2147483647, %v1383_v15  ;;  %v1782_v54 = vadd.f32 0.5, %v177_v27 }
  0x4a   :  { %v1387_v26 = vpop.eup %1386  ;;  %v417_v28 = vadd.f32 1.0, %v1764_v21  ;;  %v210_v40 = vsub.f32 1.0, %v1755_v16  ;;  %v420_v59 = vmul.f32 -0.5, %v1764_v21  ;;  %v423_v61 = vand.u32 2147483647, %v1764_v21 }
  0x4b   :  { %v1389_v33 = vpop.eup %1388  ;;  %1408 = vlog2.f32 %v426_v22  ;;  %v175_v63 = vmul.f32 0.5, %v1387_v26  ;;  %v430_v3 = vadd.f32 1.0, %v429_v37  ;;  %vm1788_vm0 = vcmp.lt.f32.partialorder %v432_v43, 0.0004427343 }
  0x4c   :  { %1410 = vlog2.f32 %v417_v28  ;;  %v1391_v45 = vpop.eup %1390  ;;  %v408_v46 = vadd.f32 1.0, %v1389_v33  ;;  %v411_v9 = vmul.f32 -0.5, %v1389_v33  ;;  %v1793_v22 = vmul.f32 %v1721_v48, %v210_v40 }
  0x4d   :  { %1412 = vpow2.f32 %v275_v25  ;;  %v1393_v53 = vpop.eup %1392  ;;  %v399_v10 = vadd.f32 1.0, %v1391_v45  ;;  %v1795_v25 = vadd.f32 0.5, %v176_v44  ;;  %v1797_v27 = vmul.f32 1.442695, %v250_v39 }
  0x4e   :  { %v1786_v2 = vpop.eup %1394  ;;  %1414 = vlog2.f32 %v408_v46  ;;  %v1799_v28 = vadd.f32 0.5, %v175_v63  ;;  %v402_v26 = vmul.f32 -0.5, %v1391_v45  ;;  %v174_v32 = vmul.f32 0.5, %v1393_v53 }
  0x4f   :  { %1416 = vlog2.f32 %v399_v10  ;;  %v1801_v37 = vpop.eup %1396  ;;  %v209_v46 = vsub.f32 1.0, %v1782_v54  ;;  %v421_v43 = vadd.f32 1.0, %v420_v59  ;;  %vm1804_vm1 = vcmp.lt.f32.partialorder %v423_v61, 0.0004427343 }
  0x50   :  { %v390_v48 = vadd.f32 1.0, %v1786_v2  ;;  %v1399_v40 = vpop.eup %1398  ;;  %v431_v44 = vmul.f32 %v1383_v15, %v430_v3  ;;  %v412_v39 = vadd.f32 1.0, %v411_v9  ;;  %v414_v18 = vand.u32 2147483647, %v1389_v33 }
  0x51   :  { %v498_v63 = vmul.f32 %v1755_v16, %v1708_v34  ;;  %v1401_v10 = vpop.eup %1400  ;;  %v208_v53 = vsub.f32 1.0, %v1795_v25  ;;  %v405_v13 = vand.u32 2147483647, %v1391_v45  ;;  %v393_v59 = vmul.f32 -0.5, %v1786_v2 }
  0x52   :  { %1418 = vlog2.f32 %v390_v48  ;;  %v1813_v61 = vpop.eup %1402  ;;  %v207_v52 = vsub.f32 1.0, %v1799_v28  ;;  %v403_v6 = vadd.f32 1.0, %v402_v26  ;;  %v1816_v57 = vadd.f32 0.5, %v174_v32 }
  0x53   :  { %1293 = vmatpush3.xpose.msra.mxu0 %v498_v63  ;;  %v381_v15 = vadd.f32 1.0, %v1801_v37  ;;  %v1819_v3 = vpop.eup %1404  ;;  %v422_v34 = vmul.f32 %v1764_v21, %v421_v43  ;;  %v513_v9 = vmul.f32 %v1726_v50, %v209_v46  ;;  %v173_v55 = vmul.f32 0.5, %v1399_v40 }
  0x54   :  { %1294 = vmatprep.subr.mxu0 %v2200_v0  ;;  %v497_v48 = vmul.f32 %v1782_v54, %v1710_v35  ;;  %v1826_v49 = vpop.eup %1406  ;;  %v413_v26 = vmul.f32 %v1389_v33, %v412_v39  ;;  %vm1828_vm2 = vcmp.lt.f32.partialorder %v414_v18, 0.0004427343  ;;  %v396_v63 = vand.u32 2147483647, %v1786_v2 }
  0x55   :  { %1420 = vlog2.f32 %v381_v15  ;;  %v512_v21 = vmul.f32 %v1733_v56, %v208_v53  ;;  %vm1834_vm3 = vcmp.lt.f32.partialorder %v405_v13, 0.0004427343  ;;  %v394_v46 = vadd.f32 1.0, %v393_v59 }
  0x56   :  { %v372_v35 = vadd.f32 1.0, %v1813_v61  ;;  %v404_v33 = vmul.f32 %v1391_v45, %v403_v6  ;;  %v1840_v18 = vmul.f32 %v1744_v4, %v207_v52  ;;  %v206_v39 = vsub.f32 1.0, %v1816_v57 }
  0x57   :  { %1295 = vmatpush3.xpose.msra.mxu0 %v497_v48  ;;  %v1845_v56 = vadd.f32 0.5, %v173_v55  ;;  %v384_v13 = vmul.f32 -0.5, %v1801_v37  ;;  %v2212_v53 = vmov 0.0   ;;  %vm1851_vm4 = vcmp.lt.f32.partialorder %v396_v63, 0.0004427343 }
  0x58   :  { %v1409_v41 = vpop.eup %1408  ;;  %1422 = vlog2.f32 %v372_v35  ;;  %1296 = vmatprep.subr.mxu0 %v2212_v53  ;;  %v387_v4 = vand.u32 2147483647, %v1801_v37  ;;  %v172_v45 = vmul.f32 0.5, %v1401_v10  ;;  %v2215_v59 = vmax.f32 %v1688_v1, 0.0  ;;  %1359 = vmatprep.mubr.msk.f32.mxu1 %vm1617_vm11, %v2212_v53 }
  0x59   :  { %v1411_v43 = vpop.eup %1410  ;;  %v428_v40 = vmul.f32 0.6931472, %v1409_v41  ;;  %v395_v35 = vmul.f32 %v1786_v2, %v394_v46  ;;  %v496_v14 = vmul.f32 %v1795_v25, %v1716_v42  ;;  %v375_v10 = vmul.f32 -0.5, %v1813_v61  ;;  %1324 = vmatprep.mubr.msk.f32.mxu0 %vm1617_vm11, %v2212_v53 }
  0x5a   :  { %v1843_v15 = vpop.eup %1412  ;;  %v419_v0 = vmul.f32 0.6931472, %v1411_v43  ;;  %v385_v30 = vadd.f32 1.0, %v384_v13  ;;  %v2217_v46 = vmax.f32 %v1694_v8, 0.0  ;;  %vm1879_vm5 = vcmp.lt.f32.partialorder %v387_v4, 0.0004427343 }
  0x5b   :  { %v434_v41 = vsel %vm1788_vm0, %v431_v44, %v428_v40  ;;  %v1415_v52 = vpop.eup %1414  ;;  %v2216_v44 = vmax.f32 %v1691_v5, 0.0  ;;  %v1866_v40 = vmul.f32 %v1751_v11, %v206_v39  ;;  %1297 = vmatpush3.xpose.msra.mxu0 %v496_v14  ;;  %v378_v32 = vand.u32 2147483647, %v1813_v61 }
  0x5c   :  { %v450_v55 = vadd.f32 %v434_v41, %v2215_v59  ;;  %v425_v48 = vsel %vm1804_vm1, %v422_v34, %v419_v0  ;;  %v410_v43 = vmul.f32 0.6931472, %v1415_v52  ;;  %v1417_v60 = vpop.eup %1416  ;;  %v205_v41 = vsub.f32 1.0, %v1845_v56  ;;  %1298 = vmatprep.subr.mxu0 %v2212_v53 }
  0x5d   :  { %v449_v63 = vadd.f32 %v425_v48, %v2216_v44  ;;  %v363_v0 = vadd.f32 1.0, %v1843_v15  ;;  %v401_v5 = vmul.f32 0.6931472, %v1417_v60  ;;  %v1873_v34 = vadd.f32 0.5, %v172_v45 }
  0x5e   :  { %v466_v1 = vmul.f32 %v450_v55, %v450_v55  ;;  %v416_v42 = vsel %vm1828_vm2, %v413_v26, %v410_v43  ;;  %v376_v60 = vadd.f32 1.0, %v375_v10  ;;  %v386_v4 = vmul.f32 %v1801_v37, %v385_v30 }
  0x5f   :  { %v465_v2 = vmul.f32 %v449_v63, %v449_v63  ;;  %v448_v39 = vadd.f32 %v416_v42, %v2217_v46  ;;  %1424 = vlog2.f32 %v363_v0  ;;  %v1419_v13 = vpop.eup %1418  ;;  %v407_v26 = vsel %vm1834_vm3, %v404_v33, %v401_v5  ;;  %v1916_v0 = vld [vmem:[#allocation11 + $0x28] sm:$0xff] }
  0x60   :  { %v530_v11 = vadd.f32 %v1793_v22, %v466_v1  ;;  %v2220_v22 = vmax.f32 %v1696_v12, 0.0  ;;  %v392_v48 = vmul.f32 0.6931472, %v1419_v13  ;;  %v204_v14 = vsub.f32 1.0, %v1873_v34 }
  0x61   :  { %v529_v59 = vadd.f32 %v513_v9, %v465_v2  ;;  %v464_v55 = vmul.f32 %v448_v39, %v448_v39  ;;  %v366_v44 = vmul.f32 -0.5, %v1843_v15  ;;  %v495_v9 = vmul.f32 %v1799_v28, %v1728_v51 }
  0x62   :  { %v546_v45 = vmul.f32 %v530_v11, %v1755_v16  ;;  %v447_v8 = vadd.f32 %v407_v26, %v2220_v22  ;;  %v1421_v50 = vpop.eup %1420  ;;  %v398_v12 = vsel %vm1851_vm4, %v395_v35, %v392_v48  ;;  %v2221_v37 = vmax.f32 %v1699_v19, 0.0  ;;  %v120_v19 = vld [vmem:[#allocation12 + $0x28] sm:$0xff] }
  0x63   :  { %v545_v33 = vmul.f32 %v529_v59, %v1782_v54  ;;  %v528_v63 = vadd.f32 %v512_v21, %v464_v55  ;;  %v383_v10 = vmul.f32 0.6931472, %v1421_v50  ;;  %1299 = vmatpush3.xpose.msra.mxu0 %v495_v9  ;;  %1426 = vpow2.f32 %v1797_v27  ;;  %v1932_v59 = vld [vmem:[#allocation11 + $0x20] sm:$0xff] }
  0x64   :  { %1328 = vmatpush3.xpose.msra.mxu1 %v546_v45  ;;  %v463_v16 = vmul.f32 %v447_v8, %v447_v8  ;;  %v446_v43 = vadd.f32 %v398_v12, %v2221_v37  ;;  %v494_v51 = vmul.f32 %v1816_v57, %v1736_v58  ;;  %v377_v1 = vmul.f32 %v1813_v61, %v376_v60  ;;  %v119_v45 = vld [vmem:[#allocation12 + $0x20] sm:$0xff] }
  0x65   :  { %1329 = vmatprep.subr.mxu1 %v2212_v53  ;;  %vm1904_vm6 = vcmp.lt.f32.partialorder %v378_v32, 0.0004427343  ;;  %v171_v21 = vmul.f32 0.5, %v1819_v3  ;;  %1300 = vmatprep.subr.mxu0 %v2212_v53  ;;  %1428 = vtanh.f32 %v1779_v47  ;;  %v1423_v6 = vpop.eup %1422  ;;  %v544_v35 = vmul.f32 %v528_v63, %v1795_v25 }
  0x66   :  { %v389_v27 = vsel %vm1879_vm5, %v386_v4, %v383_v10  ;;  %v367_v58 = vadd.f32 1.0, %v366_v44  ;;  %v2224_v61 = vand.u32 2147483647, %v1772_v31  ;;  %v527_v3 = vadd.f32 %v1840_v18, %v463_v16 }
  0x67   :  { %v462_v2 = vmul.f32 %v446_v43, %v446_v43  ;;  %v2225_v42 = vmax.f32 %v1702_v24, 0.0  ;;  %v374_v5 = vmul.f32 0.6931472, %v1423_v6  ;;  %v369_v25 = vand.u32 2147483647, %v1843_v15  ;;  %1301 = vmatpush3.xpose.msra.mxu0 %v494_v51  ;;  %v1970_v6 = vld [vmem:[#allocation11 + $0x10] sm:$0xff] }
  0x68   :  { %v249_v30 = vsub.f32 0.0, %v2224_v61  ;;  %1330 = vmatpush3.xpose.msra.mxu1 %v545_v33  ;;  %v493_v46 = vmul.f32 %v1845_v56, %v1740_v62  ;;  %v136_v39 = vmul.f32 0.5, %v120_v19  ;;  %v509_v52 = vmul.f32 %v1759_v17, %v205_v41  ;;  %1302 = vmatprep.subr.mxu0 %v2212_v53  ;;  %v118_v19 = vld [vmem:[#allocation12 + $0x18] sm:$0xff] }
  0x69   :  { %v445_v47 = vadd.f32 %v389_v27, %v2225_v42  ;;  %1331 = vmatprep.subr.mxu1 %v2212_v53  ;;  %v380_v18 = vsel %vm1904_vm6, %v377_v1, %v374_v5  ;;  %v1928_v13 = vadd.f32 0.5, %v171_v21  ;;  %v232_v24 = vand.u32 2147483647, %v1916_v0  ;;  %v89_v5 = vld [vmem:[#allocation9 + $0x30] sm:$0xff] }
  0x6a   :  { %v271_v11 = vmul.f32 1.442695, %v249_v30  ;;  %v2226_v60 = vmax.f32 %v1705_v29, 0.0  ;;  %v368_v62 = vmul.f32 %v1843_v15, %v367_v58  ;;  %v543_v17 = vmul.f32 %v527_v3, %v1799_v28  ;;  %v1948_v28 = vld [vmem:[#allocation11 + $0x18] sm:$0xff] }
  0x6b   :  { %v461_v26 = vmul.f32 %v445_v47, %v445_v47  ;;  %v526_v41 = vadd.f32 %v1866_v40, %v462_v2  ;;  %v248_v55 = vsub.f32 0.0, %v232_v24  ;;  %v508_v8 = vmul.f32 %v1768_v23, %v204_v14  ;;  %1303 = vmatpush3.xpose.msra.mxu0 %v493_v46  ;;  %v1981_v46 = vld [vmem:[#allocation11 + $0x8] sm:$0xff] }
  0x6c   :  { %v444_v32 = vadd.f32 %v380_v18, %v2226_v60  ;;  %1430 = vpow2.f32 %v271_v11  ;;  %1332 = vmatpush3.xpose.msra.mxu1 %v544_v35  ;;  %v1425_v22 = vpop.eup %1424  ;;  %vm1941_vm7 = vcmp.lt.f32.partialorder %v369_v25, 0.0004427343  ;;  %v492_v29 = vmul.f32 %v1873_v34, %v1747_v7  ;;  %1304 = vmatprep.subr.mxu0 %v2212_v53  ;;  %v90_v35 = vld [vmem:[#allocation9 + $0x38] sm:$0xff]  ;;  %v117_v25 = vld [vmem:[#allocation12 + $0x10] sm:$0xff] }
  0x6d   :  { %1432 = vtanh.f32 %v136_v39  ;;  %1333 = vmatprep.subr.mxu1 %v2212_v53  ;;  %v231_v15 = vand.u32 2147483647, %v1932_v59  ;;  %v203_v40 = vsub.f32 1.0, %v1928_v13  ;;  %v365_v4 = vmul.f32 0.6931472, %v1425_v22 }
  0x6e   :  { %v269_v44 = vmul.f32 1.442695, %v248_v55  ;;  %v135_v9 = vmul.f32 0.5, %v119_v45  ;;  %v525_v23 = vadd.f32 %v509_v52, %v461_v26  ;;  %v460_v14 = vmul.f32 %v444_v32, %v444_v32  ;;  %v116_v32 = vld [vmem:[#allocation12 + $0x8] sm:$0xff] }
  0x6f   :  { %v170_v50 = vmul.f32 0.5, %v1826_v49  ;;  %v247_v33 = vsub.f32 0.0, %v231_v15  ;;  %v542_v63 = vmul.f32 %v526_v41, %v1816_v57  ;;  %v371_v7 = vsel %vm1941_vm7, %v368_v62, %v365_v4  ;;  %1305 = vmatpush3.xpose.msra.mxu0 %v492_v29  ;;  %v2230_v15 = vld [vmem:[#allocation21_spill] sm:$0xff] }
  0x70   :  { %1334 = vmatpush3.xpose.msra.mxu1 %v543_v17  ;;  %1434 = vpow2.f32 %v269_v44  ;;  %v2229_v16 = vmax.f32 %v1712_v36, 0.0  ;;  %v491_v43 = vmul.f32 %v1928_v13, %v1762_v20  ;;  %v230_v49 = vand.u32 2147483647, %v1948_v28  ;;  %v1962_v10 = vpop.eup %1426  ;;  %1306 = vmatprep.subr.mxu0 %v2212_v53 }
  0x71   :  { %1335 = vmatprep.subr.mxu1 %v2212_v53  ;;  %v267_v37 = vmul.f32 1.442695, %v247_v33  ;;  %v507_v57 = vmul.f32 %v1776_v38, %v203_v40  ;;  %1436 = vtanh.f32 %v135_v9  ;;  %v541_v1 = vmul.f32 %v525_v23, %v1845_v56  ;;  %v2001_v23 = vld [vmem:[#allocation11] sm:$0xff] }
  0x72   :  { %v443_v12 = vadd.f32 %v371_v7, %v2229_v16  ;;  %v1429_v51 = vpop.eup %1428  ;;  %v524_v54 = vadd.f32 %v508_v8, %v460_v14  ;;  %v1967_v36 = vadd.f32 0.5, %v170_v50  ;;  %v354_v21 = vadd.f32 1.0, %v1962_v10 }
  0x73   :  { %v169_v27 = vmul.f32 0.5, %v1429_v51  ;;  %1438 = vpow2.f32 %v267_v37  ;;  %v246_v38 = vsub.f32 0.0, %v230_v49  ;;  %1307 = vmatpush3.xpose.msra.mxu0 %v491_v43  ;;  %v134_v58 = vmul.f32 0.5, %v118_v19  ;;  %v115_v37 = vld [vmem:[#allocation12] sm:$0xff] }
  0x74   :  { %1336 = vmatpush3.xpose.msra.mxu1 %v542_v63  ;;  %v459_v20 = vmul.f32 %v443_v12, %v443_v12  ;;  %1440 = vlog2.f32 %v354_v21  ;;  %v490_v56 = vmul.f32 %v1967_v36, %v90_v35  ;;  %1308 = vmatprep.subr.mxu0 %v2212_v53  ;;  %v229_v30 = vand.u32 2147483647, %v1970_v6  ;;  %v87_v51 = vld [vmem:[#allocation9 + $0x20] sm:$0xff] }
  0x75   :  { %1337 = vmatprep.subr.mxu1 %v2212_v53  ;;  %v265_v61 = vmul.f32 1.442695, %v246_v38  ;;  %v1976_v3 = vadd.f32 0.5, %v169_v27  ;;  %v540_v42 = vmul.f32 %v524_v54, %v1873_v34  ;;  %v357_v52 = vmul.f32 -0.5, %v1962_v10 }
  0x76   :  { %v523_v47 = vadd.f32 %v507_v57, %v459_v20  ;;  %v245_v11 = vsub.f32 0.0, %v229_v30  ;;  %v133_v60 = vmul.f32 0.5, %v117_v25  ;;  %v228_v62 = vand.u32 2147483647, %v1981_v46 }
  0x77   :  { %1442 = vpow2.f32 %v265_v61  ;;  %1309 = vmatpush3.xpose.msra.mxu0 %v490_v56  ;;  %v489_v24 = vmul.f32 %v1976_v3, %v89_v5  ;;  %v202_v17 = vsub.f32 1.0, %v1967_v36  ;;  %v474_v41 = vmul.f32 %v90_v35, %v90_v35 }
  0x78   :  { %1338 = vmatpush3.xpose.msra.mxu1 %v541_v1  ;;  %1444 = vtanh.f32 %v134_v58  ;;  %v263_v34 = vmul.f32 1.442695, %v245_v11  ;;  %1310 = vmatprep.subr.mxu0 %v2212_v53  ;;  %v539_v45 = vmul.f32 %v523_v47, %v1928_v13  ;;  %v358_v22 = vadd.f32 1.0, %v357_v52  ;;  %v88_v13 = vld [vmem:[#allocation9 + $0x28] sm:$0xff] }
  0x79   :  { %v1978_v2 = vpop.eup %1430  ;;  %1339 = vmatprep.subr.mxu1 %v2212_v53  ;;  %v360_v8 = vand.u32 2147483647, %v1962_v10  ;;  %v244_v29 = vsub.f32 0.0, %v228_v62  ;;  %v218_v40 = vmax.f32 %v2230_v15, 0.0  ;;  %v217_v4 = vmax.f32 %v1772_v31, 0.0 }
  0x7a   :  { %v1433_v39 = vpop.eup %1432  ;;  %v345_v18 = vadd.f32 1.0, %v1978_v2  ;;  %v132_v9 = vmul.f32 0.5, %v116_v32  ;;  %v348_v50 = vmul.f32 -0.5, %v1978_v2  ;;  %v506_v7 = vmul.f32 %v474_v41, %v202_v17 }
  0x7b   :  { %v168_v26 = vmul.f32 0.5, %v1433_v39  ;;  %1311 = vmatpush3.xpose.msra.mxu0 %v489_v24  ;;  %v261_v33 = vmul.f32 1.442695, %v244_v29  ;;  %v473_v16 = vmul.f32 %v89_v5, %v89_v5  ;;  %v216_v12 = vmax.f32 %v1916_v0, 0.0  ;;  %v85_v0 = vld [vmem:[#allocation9 + $0x10] sm:$0xff] }
  0x7c   :  { %1446 = vlog2.f32 %v345_v18  ;;  %1340 = vmatpush3.xpose.msra.mxu1 %v540_v42  ;;  %1312 = vmatprep.subr.mxu0 %v2212_v53  ;;  %v359_v49 = vmul.f32 %v1962_v10, %v358_v22  ;;  %vm2010_vm8 = vcmp.lt.f32.partialorder %v360_v8, 0.0004427343  ;;  %v227_v1 = vand.u32 2147483647, %v2001_v23  ;;  %v2034_v18 = vld [vmem:[#allocation9 + $0x18] sm:$0xff] }
  0x7d   :  { %1448 = vpow2.f32 %v263_v34  ;;  %v1991_v55 = vpop.eup %1434  ;;  %1341 = vmatprep.subr.mxu1 %v2212_v53  ;;  %v1995_v48 = vadd.f32 0.5, %v168_v26  ;;  %v351_v21 = vand.u32 2147483647, %v1978_v2  ;;  %v349_v10 = vadd.f32 1.0, %v348_v50 }
  0x7e   :  { %v336_v44 = vadd.f32 1.0, %v1991_v55  ;;  %v1437_v14 = vpop.eup %1436  ;;  %1450 = vtanh.f32 %v133_v60  ;;  %v339_v27 = vmul.f32 -0.5, %v1991_v55  ;;  %v131_v38 = vmul.f32 0.5, %v115_v37 }
  0x7f   :  { %v488_v63 = vmul.f32 %v1995_v48, %v88_v13  ;;  %v167_v19 = vmul.f32 0.5, %v1437_v14  ;;  %v472_v56 = vmul.f32 %v88_v13, %v88_v13  ;;  %v215_v58 = vmax.f32 %v1932_v59, 0.0 }
  0x80   :  { %1342 = vmatpush3.xpose.msra.mxu1 %v539_v45  ;;  %1452 = vlog2.f32 %v336_v44  ;;  %v2006_v43 = vpop.eup %1438  ;;  %v2020_v61 = vmul.f32 %v87_v51, %v87_v51  ;;  %v201_v47 = vsub.f32 1.0, %v1976_v3  ;;  %v214_v5 = vmax.f32 %v1948_v28, 0.0 }
  0x81   :  { %1343 = vmatprep.subr.mxu1 %v2212_v53  ;;  %1454 = vpow2.f32 %v261_v33  ;;  %1313 = vmatpush3.xpose.msra.mxu0 %v488_v63  ;;  %v1441_v54 = vpop.eup %1440  ;;  %v327_v20 = vadd.f32 1.0, %v2006_v43  ;;  %v243_v25 = vsub.f32 0.0, %v227_v1  ;;  %vm2028_vm9 = vcmp.lt.f32.partialorder %v351_v21, 0.0004427343 }
  0x82   :  { %1456 = vtanh.f32 %v132_v9  ;;  %1314 = vmatprep.subr.mxu0 %v2212_v53  ;;  %v356_v35 = vmul.f32 0.6931472, %v1441_v54  ;;  %v2032_v52 = vadd.f32 0.5, %v167_v19  ;;  %v350_v34 = vmul.f32 %v1978_v2, %v349_v10 }
  0x83   :  { %1458 = vlog2.f32 %v327_v20  ;;  %v200_v60 = vsub.f32 1.0, %v1995_v48  ;;  %v340_v32 = vadd.f32 1.0, %v339_v27  ;;  %v330_v17 = vmul.f32 -0.5, %v2006_v43 }
  0x84   :  { %v2022_v30 = vpop.eup %1442  ;;  %v362_v42 = vsel %vm2010_vm8, %v359_v49, %v356_v35  ;;  %1460 = vtanh.f32 %v131_v38  ;;  %v487_v41 = vmul.f32 %v2032_v52, %v87_v51  ;;  %v342_v29 = vand.u32 2147483647, %v1991_v55 }
  0x85   :  { %v442_v11 = vadd.f32 %v362_v42, %v218_v40  ;;  %v318_v24 = vadd.f32 1.0, %v2022_v30  ;;  %v1445_v26 = vpop.eup %1444  ;;  %v2046_v15 = vmul.f32 %v2034_v18, %v2034_v18  ;;  %v259_v2 = vmul.f32 1.442695, %v243_v25 }
  0x86   :  { %v505_v13 = vmul.f32 %v473_v16, %v201_v47  ;;  %v213_v44 = vmax.f32 %v1970_v6, 0.0  ;;  %1315 = vmatpush3.xpose.msra.mxu0 %v487_v41  ;;  %v341_v50 = vmul.f32 %v1991_v55, %v340_v32  ;;  %v166_v33 = vmul.f32 0.5, %v1445_v26 }
  0x87   :  { %v458_v45 = vmul.f32 %v442_v11, %v442_v11  ;;  %1462 = vlog2.f32 %v318_v24  ;;  %v321_v63 = vmul.f32 -0.5, %v2022_v30  ;;  %1316 = vmatprep.subr.mxu0 %v2212_v53  ;;  %v331_v16 = vadd.f32 1.0, %v330_v17 }
  0x88   :  { %vm2058_vm10 = vcmp.lt.f32.partialorder %v342_v29, 0.0004427343  ;;  %v504_v1 = vmul.f32 %v472_v56, %v200_v60  ;;  %v333_v55 = vand.u32 2147483647, %v2006_v43  ;;  %v324_v39 = vand.u32 2147483647, %v2022_v30 }
  0x89   :  { %v1447_v62 = vpop.eup %1446  ;;  %v522_v40 = vadd.f32 %v506_v7, %v458_v45  ;;  %v322_v20 = vadd.f32 1.0, %v321_v63  ;;  %v332_v56 = vmul.f32 %v2006_v43, %v331_v16  ;;  %vm1169_vm4 = vcmask 1040384  }
  0x8a   :  { %v2041_v22 = vpop.eup %1448  ;;  %v347_v8 = vmul.f32 0.6931472, %v1447_v62  ;;  %vm2078_vm12 = vcmp.lt.f32.partialorder %v333_v55, 0.0004427343  ;;  %vm2097_vm13 = vcmp.lt.f32.partialorder %v324_v39, 0.0004427343 }
  0x8b   :  { %v309_v9 = vadd.f32 1.0, %v2041_v22  ;;  %v1451_v37 = vpop.eup %1450  ;;  %v538_v49 = vmul.f32 %v522_v40, %v1967_v36  ;;  %v199_v36 = vsub.f32 1.0, %v2032_v52  ;;  %v312_v42 = vmul.f32 -0.5, %v2041_v22 }
  0x8c   :  { %v353_v14 = vsel %vm2028_vm9, %v350_v34, %v347_v8  ;;  %v165_v35 = vmul.f32 0.5, %v1451_v37  ;;  %v323_v62 = vmul.f32 %v2022_v30, %v322_v20  ;;  %v2111_v37 = vld [vmem:[%s2196_s5] sm:$0x1] }
  0x8d   :  { %v441_v7 = vadd.f32 %v353_v14, %v217_v4  ;;  %1464 = vlog2.f32 %v309_v9  ;;  %v1453_v57 = vpop.eup %1452  ;;  %1344 = vmatpush3.xpose.msra.mxu1 %v538_v49  ;;  %v2067_v4 = vadd.f32 0.5, %v166_v33  ;;  %v503_v43 = vmul.f32 %v2020_v61, %v199_v36 }
  0x8e   :  { %1466 = vpow2.f32 %v259_v2  ;;  %v2063_v54 = vpop.eup %1454  ;;  %v338_v19 = vmul.f32 0.6931472, %v1453_v57  ;;  %1345 = vmatprep.subr.mxu1 %v2212_v53  ;;  %v313_v41 = vadd.f32 1.0, %v312_v42  ;;  %v469_v9 = vmul.f32 %v85_v0, %v85_v0 }
  0x8f   :  { %v457_v21 = vmul.f32 %v441_v7, %v441_v7  ;;  %v1457_v31 = vpop.eup %1456  ;;  %v300_v10 = vadd.f32 1.0, %v2063_v54  ;;  %v198_v32 = vsub.f32 1.0, %v2067_v4  ;;  %v486_v61 = vmul.f32 %v2067_v4, %v2034_v18 }
  0x90   :  { %v344_v38 = vsel %vm2058_vm10, %v341_v50, %v338_v19  ;;  %v1459_v47 = vpop.eup %1458  ;;  %v164_v34 = vmul.f32 0.5, %v1457_v31  ;;  %v303_v40 = vmul.f32 -0.5, %v2063_v54  ;;  %v212_v50 = vmax.f32 %v1981_v46, 0.0 }
  0x91   :  { %v521_v27 = vadd.f32 %v505_v13, %v457_v21  ;;  %v440_v25 = vadd.f32 %v344_v38, %v216_v12  ;;  %1468 = vlog2.f32 %v300_v10  ;;  %v329_v26 = vmul.f32 0.6931472, %v1459_v47  ;;  %v1461_v45 = vpop.eup %1460  ;;  %1317 = vmatpush3.xpose.msra.mxu0 %v486_v61 }
  0x92   :  { %v2087_v12 = vadd.f32 0.5, %v165_v35  ;;  %v2102_v14 = vadd.f32 0.5, %v164_v34  ;;  %v502_v63 = vmul.f32 %v2046_v15, %v198_v32  ;;  %1318 = vmatprep.subr.mxu0 %v2212_v53  ;;  %v314_v46 = vmul.f32 %v2041_v22, %v313_v41 }
  0x93   :  { %v537_v24 = vmul.f32 %v521_v27, %v1976_v3  ;;  %v456_v60 = vmul.f32 %v440_v25, %v440_v25  ;;  %v335_v17 = vsel %vm2078_vm12, %v332_v56, %v329_v26  ;;  %v315_v3 = vand.u32 2147483647, %v2041_v22 }
  0x94   :  { %v1463_v8 = vpop.eup %1462  ;;  %v439_v30 = vadd.f32 %v335_v17, %v215_v58  ;;  %v197_v59 = vsub.f32 1.0, %v2087_v12  ;;  %v84_v58 = vld [vmem:[#allocation9 + $0x8] sm:$0xff]  ;;  %v163_v15 = vmul.f32 0.5, %v1461_v45  ;;  %v304_v51 = vadd.f32 1.0, %v303_v40  ;;  %v83_v17 = vld [vmem:[#allocation9] sm:$0xff] }
  0x95   :  { %1346 = vmatpush3.xpose.msra.mxu1 %v537_v24  ;;  %v520_v29 = vadd.f32 %v504_v1, %v456_v60  ;;  %v320_v13 = vmul.f32 0.6931472, %v1463_v8  ;;  %vm2117_vm14 = vcmp.lt.f32.partialorder %v315_v3, 0.0004427343  ;;  %v306_v1 = vand.u32 2147483647, %v2063_v54 }
  0x96   :  { %1347 = vmatprep.subr.mxu1 %v2212_v53  ;;  %v455_v33 = vmul.f32 %v439_v30, %v439_v30  ;;  %v2127_v22 = vmul.f32 %v84_v58, %v84_v58  ;;  %v690_v19 = vmax.f32 %v2102_v14, 1e-08  ;;  %v1125_v36 = vand.u32 2147483647, %v2111_v37 }
  0x97   :  { %v536_v18 = vmul.f32 %v520_v29, %v1995_v48  ;;  %v326_v49 = vsel %vm2097_vm13, %v323_v62, %v320_v13  ;;  %v501_v35 = vmul.f32 %v469_v9, %v197_v59  ;;  %v196_v10 = vsub.f32 1.0, %v2102_v14 }
  0x98   :  { %v519_v16 = vadd.f32 %v503_v43, %v455_v33  ;;  %v438_v57 = vadd.f32 %v326_v49, %v214_v5  ;;  %v2136_v27 = vadd.f32 0.5, %v163_v15  ;;  %v1126_v38 = vsub.f32 0.0, %v1125_v36 }
  0x99   :  { %1348 = vmatpush3.xpose.msra.mxu1 %v536_v18  ;;  %v305_v47 = vmul.f32 %v2063_v54, %v304_v51  ;;  %vm2142_vm15 = vcmp.lt.f32.partialorder %v306_v1, 0.0004427343  ;;  %v706_v11 = vmin.f32 %v690_v19, 1.0  ;;  %v485_v24 = vmul.f32 %v2087_v12, %v85_v0 }
  0x9a   :  { %v1465_v7 = vpop.eup %1464  ;;  %1349 = vmatprep.subr.mxu1 %v2212_v53  ;;  %v535_v31 = vmul.f32 %v519_v16, %v2032_v52  ;;  %v454_v20 = vmul.f32 %v438_v57, %v438_v57  ;;  %v1127_v39 = vmul.f32 1.442695, %v1126_v38  ;;  %v484_v6 = vmul.f32 %v2102_v14, %v84_v58 }
  0x9b   :  { %v2124_v55 = vpop.eup %1466  ;;  %v311_v21 = vmul.f32 0.6931472, %v1465_v7  ;;  %1319 = vmatpush3.xpose.msra.mxu0 %v485_v24  ;;  %v689_v32 = vmax.f32 %v2136_v27, 1e-08  ;;  %v500_v62 = vmul.f32 %v2127_v22, %v196_v10  ;;  %v786_v0 = vmul.f32 4.0, %v706_v11 }
  0x9c   :  { %v291_v28 = vadd.f32 1.0, %v2124_v55  ;;  %v518_v56 = vadd.f32 %v502_v63, %v454_v20  ;;  %v294_v60 = vmul.f32 -0.5, %v2124_v55  ;;  %1320 = vmatprep.subr.mxu0 %v2212_v53  ;;  %v483_v3 = vmul.f32 %v2136_v27, %v83_v17  ;;  %v547_v63 = vld [vmem:[#allocation5] sm:$0xff] }
  0x9d   :  { %v317_v5 = vsel %vm2117_vm14, %v314_v46, %v311_v21  ;;  %1350 = vmatpush3.xpose.msra.mxu1 %v535_v31  ;;  %v705_v8 = vmin.f32 %v689_v32, 1.0  ;;  %v914_v29 = vsub.f32 1.0, %v706_v11  ;;  %v297_v2 = vand.u32 2147483647, %v2124_v55 }
  0x9e   :  { %v437_v42 = vadd.f32 %v317_v5, %v213_v44  ;;  %1470 = vlog2.f32 %v291_v28  ;;  %v1469_v52 = vpop.eup %1468  ;;  %1351 = vmatprep.subr.mxu1 %v2212_v53  ;;  %v534_v26 = vmul.f32 %v518_v56, %v2067_v4  ;;  %v295_v61 = vadd.f32 1.0, %v294_v60 }
  0x9f   :  { %v302_v34 = vmul.f32 0.6931472, %v1469_v52  ;;  %1472 = vpow2.f32 %v1127_v39  ;;  %1321 = vmatpush3.xpose.msra.mxu0 %v484_v6  ;;  %v913_v40 = vsub.f32 1.0, %v705_v8  ;;  %v930_v9 = vmul.f32 1.3333334, %v914_v29 }
  0xa0   :  { %v453_v43 = vmul.f32 %v437_v42, %v437_v42  ;;  %1322 = vmatprep.subr.mxu0 %v2212_v53  ;;  %v296_v13 = vmul.f32 %v2124_v55, %v295_v61  ;;  %v195_v18 = vsub.f32 1.0, %v2136_v27  ;;  %v211_v33 = vmax.f32 %v2001_v23, 0.0 }
  0xa1   :  { %1352 = vmatpush3.xpose.msra.mxu1 %v534_v26  ;;  %v308_v54 = vsel %vm2142_vm15, %v305_v47, %v302_v34  ;;  %vm298_vm0 = vcmp.lt.f32.partialorder %v297_v2, 0.0004427343  ;;  %v785_v59 = vmul.f32 4.0, %v705_v8  ;;  %v929_v49 = vmul.f32 1.3333334, %v913_v40 }
  0xa2   :  { %v517_v44 = vadd.f32 %v501_v35, %v453_v43  ;;  %1353 = vmatprep.subr.mxu1 %v2212_v53  ;;  %v436_v4 = vadd.f32 %v308_v54, %v212_v50  ;;  %v467_v46 = vmul.f32 %v83_v17, %v83_v17  ;;  %v618_v36 = vmul.f32 %v547_v63, %v547_v63 }
  0xa3   :  { %1323 = vmatpush3.xpose.msra.mxu0 %v483_v3  ;;  %v1124_v24 = vmax.f32 %v2111_v37, 0.0  ;;  %v1045_v54 = vlaneseq }
  0xa4   :  { %v533_v45 = vmul.f32 %v517_v44, %v2087_v12  ;;  %v452_v41 = vmul.f32 %v436_v4, %v436_v4  ;;  %1474 = vlog2.f32 %v436_v4  ;;  %v499_v16 = vmul.f32 %v467_v46, %v195_v18 }
  0xa5   :  { %1476 = vlog2.f32 %v786_v0  ;;  %v1046_v3 = vand.u32 127, %v1045_v54 }
  0xa6   :  { %1354 = vmatpush3.xpose.msra.mxu1 %v533_v45  ;;  %v516_v30 = vadd.f32 %v500_v62, %v452_v41  ;;  %1325 = vmatmul.mubr.f32.vlgmr.msra.gmra.mxu0 %v547_v63  ;;  %1478 = vlog2.f32 %v930_v9  ;;  %v850_v28 = vadd.f32 %v2127_v22, %v452_v41 }
  0xa7   :  { %1355 = vmatprep.subr.mxu1 %v2212_v53  ;;  %1480 = vlog2.f32 %v785_v59  ;;  %vm1065_vm2 = vcmp.lt.s32.totalorder %v1046_v3, 32  ;;  %vm1167_vm3 = vcmp.lt.s32.totalorder %v1046_v3, 16 }
  0xa8   :  { %v532_v12 = vmul.f32 %v516_v30, %v2102_v14  ;;  %1482 = vlog2.f32 %v929_v49  ;;  %v866_v42 = vmul.f32 0.5, %v850_v28  ;;  %v1145_v28 = vshrl.u32 %v1045_v54, 7 }
  0xaa   :  { %1356 = vmatpush3.xpose.msra.mxu1 %v532_v12 }
  0xab   :  { %v1471_v50 = vpop.eup %1470  ;;  %1357 = vmatprep.subr.mxu1 %v2212_v53 }
  0xac   :  { %v293_v58 = vmul.f32 0.6931472, %v1471_v50  ;;  %v1473_v48 = vpop.eup %1472 }
  0xad   :  { %v1129_v57 = vadd.f32 1.0, %v1473_v48  ;;  %v1132_v31 = vmul.f32 -0.5, %v1473_v48  ;;  %v1135_v47 = vand.u32 2147483647, %v1473_v48 }
  0xae   :  { %v299_v15 = vsel %vm298_vm0, %v296_v13, %v293_v58 }
  0xaf   :  { %v435_v7 = vadd.f32 %v299_v15, %v211_v33  ;;  %v1133_v5 = vadd.f32 1.0, %v1132_v31  ;;  %vm1136_vm1 = vcmp.lt.f32.partialorder %v1135_v47, 0.0004427343 }
  0xb1   :  { %v451_v23 = vmul.f32 %v435_v7, %v435_v7  ;;  %1484 = vlog2.f32 %v435_v7  ;;  %v1475_v51 = vpop.eup %1474  ;;  %v1134_v26 = vmul.f32 %v1473_v48, %v1133_v5 }
  0xb2   :  { %1486 = vlog2.f32 %v1129_v57  ;;  %v724_v53 = vmul.f32 0.6931472, %v1475_v51  ;;  %v1477_v55 = vpop.eup %1476 }
  0xb3   :  { %v515_v1 = vadd.f32 %v499_v16, %v451_v23  ;;  %v804_v35 = vmul.f32 0.6931472, %v1477_v55  ;;  %v1479_v38 = vpop.eup %1478  ;;  %v849_v6 = vadd.f32 %v467_v46, %v451_v23 }
  0xb4   :  { %v754_v19 = vsub.f32 0.0, %v724_v53  ;;  %v1481_v52 = vpop.eup %1480  ;;  %v948_v39 = vmul.f32 0.6931472, %v1479_v38  ;;  %v1146_v38 = vsub.s32 0, %v1145_v28 }
  0xb5   :  { %v531_v21 = vmul.f32 %v515_v1, %v2136_v27  ;;  %v1483_v25 = vpop.eup %1482  ;;  %v802_v32 = vmul.f32 0.6931472, %v1481_v52  ;;  %v865_v17 = vmul.f32 0.5, %v849_v6 }
  0xb6   :  { %v1242_v20 = vadd.f32 -0.5, %v754_v19  ;;  %v946_v4 = vmul.f32 0.6931472, %v1483_v25  ;;  %v978_v62 = vmul.f32 %v948_v39, %v196_v10  ;;  %v1122_v10 = vld [vmem:[%s2195_s4] sm:$0x1] }
  0xb7   :  { %1358 = vmatpush3.xpose.msra.mxu1 %v531_v21  ;;  %v1162_v9 = vmul.f32 %v1122_v10, %v1122_v10  ;;  %v1147_v25 = vrot.slane %v1122_v10, %v1146_v38 }
  0xb8   :  { %v834_v56 = vadd.f32 %v1242_v20, %v804_v35  ;;  %v977_v29 = vmul.f32 %v946_v4, %v195_v18 }
  0xba   :  { %1360 = vmatmul.mubr.f32.vlgmr.msra.gmra.mxu1 %v618_v36  ;;  %v882_v44 = vadd.f32 %v866_v42, %v834_v56 }
  0xbc   :  { %v898_v41 = vmul.f32 %v882_v44, %v2102_v14 }
  0xbe   :  { %v1485_v11 = vpop.eup %1484  ;;  %v994_v30 = vadd.f32 %v978_v62, %v898_v41 }
  0xbf   :  { %v1487_v43 = vpop.eup %1486  ;;  %v722_v34 = vmul.f32 0.6931472, %v1485_v11 }
  0xc0   :  { %v1131_v22 = vmul.f32 0.6931472, %v1487_v43  ;;  %v1083_v12 = vsel %vm1065_vm2, %v994_v30, 0.0 }
  0xc1   :  { %v753_v60 = vsub.f32 0.0, %v722_v34 }
  0xc2   :  { %v1137_v0 = vsel %vm1136_vm1, %v1134_v26, %v1131_v22  ;;  %v1204_v26 = vld [vmem:[%s2197_s6] sm:$0xff] }
  0xc3   :  { %v1241_v45 = vadd.f32 -0.5, %v753_v60  ;;  %v1138_v37 = vadd.f32 %v1137_v0, %v1124_v24 }
  0xc5   :  { %v833_v61 = vadd.f32 %v1241_v45, %v802_v32  ;;  %1488 = vlog2.f32 %v1138_v37  ;;  %v1150_v14 = vmul.f32 %v1138_v37, %v1138_v37 }
  0xc7   :  { %v881_v8 = vadd.f32 %v865_v17, %v833_v61  ;;  %v1163_v33 = vadd.f32 %v1162_v9, %v1150_v14  ;;  %v1155_v56 = vrot.slane %v1150_v14, %v1146_v38 }
  0xc9   :  { %v897_v2 = vmul.f32 %v881_v8, %v2136_v27  ;;  %v1164_v18 = vmul.f32 0.5, %v1163_v33 }
  0xcb   :  { %v993_v40 = vadd.f32 %v977_v29, %v897_v2 }
  0xcd   :  { %v1082_v13 = vsel %vm1065_vm2, %v993_v40, 0.0 }
  0xce   :  { %v1098_v50 = vadd.f32 %v1083_v12, %v1082_v13 }
  0xd0   :  { %1113 = vadd.xlane.f32.xlu0 %v1098_v50 }
  0xd2   :  { %v1489_v63 = vpop.eup %1488 }
  0xd3   :  { %v1159_v59 = vmul.f32 0.6931472, %v1489_v63 }
  0xd5   :  { %v1160_v58 = vsub.f32 0.0, %v1159_v59 }
  0xd7   :  { %v1257_v49 = vadd.f32 -0.5, %v1160_v58 }
  0xd9   :  { %v1165_v46 = vadd.f32 %v1257_v49, %v1164_v18 }
  0xdb   :  { %v1168_v27 = vsel %vm1167_vm3, %v1165_v46, 0.0 }
  0xdc   :  { %v1170_v48 = vsel %vm1169_vm4, %v1168_v27, 0.0 }
  0xdd   :  { %1171 = vadd.xlane.f32.xlu0 %v1170_v48 }
 0x159   :  { %v1114_v15 = vpop.xlane.xlu0 %1113 }
 0x15a   :  { %v1115_v7 = vrot.slane %v1114_v15, 4 }
 0x15c   :  { %v1116_v16 = vadd.f32 %v1115_v7, %v1114_v15 }
 0x15e   :  { %v1117_v57 = vrot.slane %v1116_v16, 2 }
 0x160   :  { %v1118_v23 = vadd.f32 %v1117_v57, %v1116_v16 }
 0x162   :  { %v1119_v51 = vrot.slane %v1118_v23, 1 }
 0x164   :  { %v1120_v1 = vadd.f32 %v1119_v51, %v1118_v23 }
 0x166   :  { %v1172_v53 = vpop.xlane.xlu0 %1171  ;;  %1362 = vpush %v1120_v1  ;;  %v614_v36 = vpop.f32.mrf.mxu0 }
 0x167   :  { %v1173_v55 = vrot.slane %v1172_v53, 4  ;;  %v1183_v43 = vadd.f32 %v1147_v25, %v614_v36 }
 0x168   :  { %v1326_v20 = vpop.f32.mrf.mxu0 }
 0x169   :  { %v1174_v21 = vadd.f32 %v1173_v55, %v1172_v53 }
 0x16b   :  { %v1175_v19 = vrot.slane %v1174_v21, 2 }
 0x16d   :  { %v1176_v31 = vadd.f32 %v1175_v19, %v1174_v21 }
 0x16f   :  { %v1177_v35 = vrot.slane %v1176_v31, 1 }
 0x171   :  { %v1178_v5 = vadd.f32 %v1177_v35, %v1176_v31 }
 0x173   :  { %1364 = vpush %v1178_v5 }
 0x17a   :  { %v685_v42 = vpop.f32.mrf.mxu1 }
 0x17b   :  { %v1186_v47 = vadd.f32 %v1155_v56, %v685_v42 }
 0x17c   :  { %v1361_v52 = vpop.f32.mrf.mxu1 }
 0x17d   :  { %1490 = vrsqrt.f32 %v1186_v47  ;;  %vm1199_vm5 = vcmp.eq.f32.partialorder %v1186_v47, inf  ;;  %v1202_v24 = vand.u32 2147483648, %v1186_v47  ;;  %vm1201_vm6 = vcmp.eq.f32.partialorder %v1186_v47, 0.0 }
 0x18a   :  { %v1491_v11 = vpop.eup %1490 }
 0x18b   :  { %v1198_v39 = vmul.f32 %v1491_v11, %v1186_v47 }
 0x18d   :  { %v1200_v34 = vsel %vm1199_vm5, %v1186_v47, %v1198_v39 }
 0x18e   :  { %v1203_v6 = vsel %vm1201_vm6, %v1202_v24, %v1200_v34 }
 0x18f   :  { %v1205_v44 = vmul.f32 %v1204_v26, %v1203_v6 }
 0x191   :  { %v1206_v54 = vadd.f32 %v1205_v44, %v1183_v43 }
 0x193   :  { %1207 = vst [vmem:[#allocation14] sm:$0xff] %v1206_v54 }
 0x194   :  { %1583 = shalt.err (!%p1580_p10)
}
 0x195   :  { %1220 = dma.vmem_to_hbm [thread:$0]  %s1218_s28, 128, %s2198_s7, [#allocation7]  }
 0x196   :  { %s1619_s12 = smov [#allocation15]  }
 0x197   :  { %s1363_s6 = spop %1362 }
 0x1a4   :  { %s1365_s10 = spop %1364 }
 0x1a5   :  { %s1189_s11 = sadd.f32 %s1365_s10, %s1363_s6 }
 0x1a7   :  { %1210 = sst [smem:[#allocation15]] %s1189_s11 }
 0x1a8   :  { %1228 = dma.smem_to_hbm %s1619_s12, 16, %s2199_s8, [#allocation8]  }
 0x1a9   :  { %1606 = dma.done.wait [#allocation7], 128  }
 0x1aa   :  { %1607 = vsyncadd [#allocation7], 4294967168 }
 0x1ab   :  { %1608 = dma.done.wait [#allocation8], 16  }
 0x1ac   :  { %1609 = vsyncadd [#allocation8], 4294967280 }
 0x1ad   :  { %1235 = sfence }
 0x1ae   :  { %1236 = vsyncpa [#allocation6], 1 }
 0x1af   :  { %1237 = vsyncpa [#allocation10], 1 }
 0x1b0   :  { %1238 = vsyncpa [#allocation13], 1 }
 0x1b1   :  { %1239 = vsyncpa [#allocation7], 1 }
 0x1b2   :  { %1240 = vsyncpa [#allocation8], 1 }

</bundles_post_ra>
